<compile_context>
chip_gen: v6e
topology: v6e:2x2x1
jax: 0.10.0
libtpu: 0.0.40
codegen_flags: <defaults>
</compile_context>

<pallas_src>
import jax
import jax.numpy as jnp
from jax import lax
from jax.experimental import pallas as pl
from jax.experimental.pallas import tpu as pltpu

HIDDEN = 16  # matches self.hidden_size = 16 in the PyTorch module


# ----------------------------------------------------------------------------
# Pallas kernel
# ----------------------------------------------------------------------------
def words_rnn_kernel(x_ref,        # (T*B, I)  time-major flattened input
                     wall_ref,     # (I, 8H)   fused input->gate weights (both dirs)
                     whh_ref,      # (2H, 8H)  block-diagonal recurrent weights
                     b_ref,        # (1, 8H)   fused bias (b_ih + b_hh, both dirs)
                     wout_ref,     # (4H, O_pad) linear head (lane padded)
                     bout_ref,     # (1, O_pad)
                     out_ref):     # (B, O_pad)
    B = out_ref.shape[0]
    T = x_ref.shape[0] // B
    H = HIDDEN

    # ---- Hoisted, loop-invariant setup --------------------------------------
    whh = whh_ref[...]                                         # (2H, 8H)
    lane = lax.broadcasted_iota(jnp.int32, (B, 8 * H), 1)
    # Packed gate/direction lane layout: [i_f i_b f_f f_b g_f g_b o_f o_b].
    g_band = jnp.logical_and(lane >= 4 * H, lane < 6 * H)      # tanh gate band
    fwd_band = jnp.bitwise_and(lane, 2 * H - 1) < H            # forward-dir lanes
    # sigmoid(z) = 0.5*tanh(z/2) + 0.5; the z/2 pre-scale is already folded into
    # the packed weights/bias, so per step: act = a * tanh(gates) + b.
    act_scale = jnp.where(g_band, 1.0, 0.5).astype(jnp.float32)
    act_shift = jnp.where(g_band, 0.0, 0.5).astype(jnp.float32)

    # ---- Input projection hoisted out of the recurrence (one MXU push) ------
    # P[t*B + b, :] = both directions' gate pre-activations computed from x[b, t].
    P = (jnp.dot(x_ref[...], wall_ref[...], preferred_element_type=jnp.float32)
         + b_ref[...])                                          # (T*B, 8H)

    # Per-step gate inputs: forward bands read x[t], backward bands read x[T-1-t].
    gates_in = [
        jnp.where(fwd_band,
                  P[t * B:(t + 1) * B, :],
                  P[(T - 1 - t) * B:(T - t) * B, :])
        for t in range(T)
    ]

    h_cat = jnp.zeros((B, 2 * H), jnp.float32)                  # [h_fwd | h_bwd]
    c_cat = jnp.zeros((B, 2 * H), jnp.float32)                  # [c_fwd | c_bwd]

    # Fully-unrolled recurrence (T static & small). Serial per-step work:
    # one recurrent dot + one whole-vreg tanh + affine + elementwise update.
    for t in range(T):
        gates = gates_in[t] + jnp.dot(h_cat, whh,
                                      preferred_element_type=jnp.float32)
        act = act_scale * jnp.tanh(gates) + act_shift           # single EUP push

        i_cat = act[:, 0 * H:2 * H]                             # [i_f | i_b]
        f_cat = act[:, 2 * H:4 * H]                             # [f_f | f_b]
        g_cat = act[:, 4 * H:6 * H]                             # [g_f | g_b]
        o_cat = act[:, 6 * H:8 * H]                             # [o_f | o_b]

        c_cat = f_cat * c_cat + i_cat * g_cat
        h_cat = o_cat * jnp.tanh(c_cat)

    # torch.cat((h[-2], h[-1], c[-2], c[-1]), dim=1) == [h_fwd, h_bwd, c_fwd, c_bwd]
    hh = jnp.concatenate([h_cat, c_cat], axis=1)                # (B, 4H)
    y = jnp.dot(hh, wout_ref[...], preferred_element_type=jnp.float32) + bout_ref[...]
    out_ref[...] = y.astype(out_ref.dtype)


# ----------------------------------------------------------------------------
# Wrapper
# ----------------------------------------------------------------------------
def words_rnn_forward(x, packed):
    """x: (B, T, input_size) batch-first, like the PyTorch module."""
    B, T, I = x.shape
    O = packed["out_size"]
    O_pad = packed["w_out"].shape[1]

    # Time-major flatten so each timestep's rows form one contiguous sublane block
    # inside the kernel (row index = t*B + b).  Tiny data; handled by XLA outside.
    x_tb = jnp.transpose(x, (1, 0, 2)).reshape(T * B, I)

    vmem = pl.BlockSpec(memory_space=pltpu.MemorySpace.VMEM)
    y_pad = pl.pallas_call(
        words_rnn_kernel,
        out_shape=jax.ShapeDtypeStruct((B, O_pad), jnp.float32),
        in_specs=[vmem] * 6,
        out_specs=vmem,
    )(x_tb, packed["w_all"], packed["whh_bd"], packed["b_all"],
      packed["w_out"], packed["b_out"])
    return y_pad[:, :O]


def pack_params(params):
    """Fuse both LSTM directions into lane-packed weights with gate-column order
    [i_f, i_b, f_f, f_b, g_f, g_b, o_f, o_b] (8H = 128 lanes).

    * w_all  (I, 8H): input projection -- forward weights in forward lane-bands,
      backward weights in backward bands (no block-diagonal zeros needed).
    * whh_bd (2H, 8H): recurrent projection -- block-diagonal so h_f only drives
      forward bands and h_b only backward bands.
    * The 0.5 pre-scale of sigmoid(z) = 0.5*tanh(z/2)+0.5 is folded into the
      i/f/o band columns of w_all, whh_bd and the bias.
    * Linear head padded to a lane-dense (multiple-of-128) output width.
    """
    H = HIDDEN
    I = params["wih_f"].shape[0]
    O = params["w_out"].shape[1]
    O_pad = ((O + 127) // 128) * 128

    def gate_chunks(w):
        return [w[:, k * H:(k + 1) * H] for k in range(4)]      # PyTorch order i,f,g,o

    gih_f, gih_b = gate_chunks(params["wih_f"]), gate_chunks(params["wih_b"])
    ghh_f, ghh_b = gate_chunks(params["whh_f"]), gate_chunks(params["whh_b"])
    gb_f, gb_b = gate_chunks(params["b_f"]), gate_chunks(params["b_b"])

    zH = jnp.zeros((H, H), jnp.float32)

    wall_cols, whh_cols, b_cols = [], [], []
    for k in range(4):              # gate order i, f, g, o; g (k==2) is the tanh gate
        s = 1.0 if k == 2 else 0.5  # fold sigmoid's z/2 pre-scale into params
        wall_cols += [s * gih_f[k], s * gih_b[k]]
        whh_cols += [jnp.concatenate([s * ghh_f[k], zH], axis=0),
                     jnp.concatenate([zH, s * ghh_b[k]], axis=0)]
        b_cols += [s * gb_f[k], s * gb_b[k]]

    w_all = jnp.concatenate(wall_cols, axis=1)                  # (I, 8H)
    whh_bd = jnp.concatenate(whh_cols, axis=1)                  # (2H, 8H)
    b_all = jnp.concatenate(b_cols, axis=1)                     # (1, 8H)

    w_out_p = jnp.zeros((4 * H, O_pad), jnp.float32).at[:, :O].set(params["w_out"])
    b_out_p = jnp.zeros((1, O_pad), jnp.float32).at[:, :O].set(params["b_out"])

    return {"w_all": w_all, "whh_bd": whh_bd, "b_all": b_all,
            "w_out": w_out_p, "b_out": b_out_p, "out_size": O}


# ----------------------------------------------------------------------------
# Pure-JAX reference (unfused, matches PyTorch semantics) for verification
# ----------------------------------------------------------------------------
def _lstm_cell(x_t, h, c, wih, whh, b):
    """One LSTM step, PyTorch gate order (i, f, g, o)."""
    H = HIDDEN
    gates = (jnp.dot(x_t, wih, preferred_element_type=jnp.float32)
             + jnp.dot(h, whh, preferred_element_type=jnp.float32)
             + b)
    i = jax.nn.sigmoid(gates[:, 0 * H:1 * H])
    f = jax.nn.sigmoid(gates[:, 1 * H:2 * H])
    g = jnp.tanh(gates[:, 2 * H:3 * H])
    o = jax.nn.sigmoid(gates[:, 3 * H:4 * H])
    c_new = f * c + i * g
    h_new = o * jnp.tanh(c_new)
    return h_new, c_new


def words_rnn_reference(x, params):
    B, T, I = x.shape
    H = HIDDEN

    def run_dir(xs, wih, whh, b):
        h = jnp.zeros((B, H), jnp.float32)
        c = jnp.zeros((B, H), jnp.float32)
        for t in range(T):
            h, c = _lstm_cell(xs[:, t, :], h, c, wih, whh, b)
        return h, c

    h_f, c_f = run_dir(x, params["wih_f"], params["whh_f"], params["b_f"])
    h_b, c_b = run_dir(x[:, ::-1, :], params["wih_b"], params["whh_b"], params["b_b"])
    hh = jnp.concatenate([h_f, h_b, c_f, c_b], axis=1)
    return hh @ params["w_out"] + params["b_out"]


def init_params(key, input_size, output_size):
    """Deterministic synthetic parameters with the PyTorch LSTM/Linear shapes
    (stored pre-transposed for right-multiplication; b = b_ih + b_hh folded)."""
    H = HIDDEN
    ks = jax.random.split(key, 8)
    scale = 0.1
    return {
        "wih_f": scale * jax.random.normal(ks[0], (input_size, 4 * H), jnp.float32),
        "whh_f": scale * jax.random.normal(ks[1], (H, 4 * H), jnp.float32),
        "b_f": scale * jax.random.normal(ks[2], (1, 4 * H), jnp.float32),
        "wih_b": scale * jax.random.normal(ks[3], (input_size, 4 * H), jnp.float32),
        "whh_b": scale * jax.random.normal(ks[4], (H, 4 * H), jnp.float32),
        "b_b": scale * jax.random.normal(ks[5], (1, 4 * H), jnp.float32),
        "w_out": scale * jax.random.normal(ks[6], (4 * H, output_size), jnp.float32),
        "b_out": scale * jax.random.normal(ks[7], (1, output_size), jnp.float32),
    }


if __name__ == "__main__":
    key = jax.random.PRNGKey(0)
    k_x, k_p = jax.random.split(key)

    batch = 8          # multiple of 8: fills all f32 sublanes (perf feedback)
    seq = 8
    input_size = 8
    output_size = 5

    x = jax.random.normal(k_x, (batch, seq, input_size), jnp.float32)
    params = init_params(k_p, input_size, output_size)
    packed = pack_params(params)

    y = words_rnn_forward(x, packed)
    y = jax.block_until_ready(y)

    y_ref = words_rnn_reference(x, params)
    assert y.shape == (batch, output_size)
    assert jnp.allclose(y, y_ref, atol=2e-5, rtol=2e-5), (y, y_ref)

    print("KERNEL_OK")
</pallas_src>

<mosaic_0001>
module attributes {stable_mosaic.version = 11 : i64} {
  func.func @words_rnn_kernel(%arg0: memref<64x8xf32, #tpu.memory_space<vmem>>, %arg1: memref<8x128xf32, #tpu.memory_space<vmem>>, %arg2: memref<32x128xf32, #tpu.memory_space<vmem>>, %arg3: memref<1x128xf32, #tpu.memory_space<vmem>>, %arg4: memref<64x128xf32, #tpu.memory_space<vmem>>, %arg5: memref<1x128xf32, #tpu.memory_space<vmem>>, %arg6: memref<8x128xf32, #tpu.memory_space<vmem>>) attributes {dimension_semantics = [], scalar_prefetch = 0 : i64, scratch_operands = 0 : i64, tpu.core_type = #tpu.core_type<tc>} {
    %c0 = arith.constant 0 : index
    %c0_0 = arith.constant 0 : index
    %0 = vector.load %arg2[%c0, %c0_0] : memref<32x128xf32, #tpu.memory_space<vmem>>, vector<32x128xf32>
    %1 = tpu.iota {dimensions = array<i32: 1>} : vector<8x128xi32>
    %c64_i32 = arith.constant 64 : i32
    %2 = vector.broadcast %c64_i32 : i32 to vector<8x128xi32>
    %3 = arith.cmpi sge, %1, %2 : vector<8x128xi32>
    %c96_i32 = arith.constant 96 : i32
    %4 = vector.broadcast %c96_i32 : i32 to vector<8x128xi32>
    %5 = arith.cmpi slt, %1, %4 : vector<8x128xi32>
    %6 = arith.andi %3, %5 : vector<8x128xi1>
    %c31_i32 = arith.constant 31 : i32
    %7 = vector.broadcast %c31_i32 : i32 to vector<8x128xi32>
    %8 = arith.andi %1, %7 : vector<8x128xi32>
    %c16_i32 = arith.constant 16 : i32
    %9 = vector.broadcast %c16_i32 : i32 to vector<8x128xi32>
    %10 = arith.cmpi slt, %8, %9 : vector<8x128xi32>
    %cst = arith.constant 1.000000e+00 : f32
    %cst_1 = arith.constant 5.000000e-01 : f32
    %11 = vector.broadcast %cst : f32 to vector<8x128xf32>
    %12 = vector.broadcast %cst_1 : f32 to vector<8x128xf32>
    %13 = arith.select %6, %11, %12 : vector<8x128xi1>, vector<8x128xf32>
    %cst_2 = arith.constant 0.000000e+00 : f32
    %cst_3 = arith.constant 5.000000e-01 : f32
    %14 = vector.broadcast %cst_2 : f32 to vector<8x128xf32>
    %15 = vector.broadcast %cst_3 : f32 to vector<8x128xf32>
    %16 = arith.select %6, %14, %15 : vector<8x128xi1>, vector<8x128xf32>
    %c0_4 = arith.constant 0 : index
    %c0_5 = arith.constant 0 : index
    %17 = vector.load %arg0[%c0_4, %c0_5] : memref<64x8xf32, #tpu.memory_space<vmem>>, vector<64x8xf32>
    %c0_6 = arith.constant 0 : index
    %c0_7 = arith.constant 0 : index
    %18 = vector.load %arg1[%c0_6, %c0_7] : memref<8x128xf32, #tpu.memory_space<vmem>>, vector<8x128xf32>
    %cst_8 = arith.constant dense<0.000000e+00> : vector<64x128xf32>
    %19 = tpu.matmul %17, %18, %cst_8 {dimension_numbers = #tpu.dot_dimension_numbers<[1], [0], [0], [1], [0, 0, 1, 1], [], []>} : vector<64x8xf32>, vector<8x128xf32>, vector<64x128xf32> -> vector<64x128xf32>
    %c0_9 = arith.constant 0 : index
    %c0_10 = arith.constant 0 : index
    %20 = vector.load %arg3[%c0_9, %c0_10] : memref<1x128xf32, #tpu.memory_space<vmem>>, vector<1x128xf32>
    %21 = vector.broadcast %20 : vector<1x128xf32> to vector<64x128xf32>
    %22 = arith.addf %19, %21 : vector<64x128xf32>
    %23 = vector.extract_strided_slice %22 {offsets = [0, 0], sizes = [8, 128], strides = [1, 1]} : vector<64x128xf32> to vector<8x128xf32>
    %24 = vector.extract_strided_slice %22 {offsets = [56, 0], sizes = [8, 128], strides = [1, 1]} : vector<64x128xf32> to vector<8x128xf32>
    %25 = arith.select %10, %23, %24 : vector<8x128xi1>, vector<8x128xf32>
    %26 = vector.extract_strided_slice %22 {offsets = [8, 0], sizes = [8, 128], strides = [1, 1]} : vector<64x128xf32> to vector<8x128xf32>
    %27 = vector.extract_strided_slice %22 {offsets = [48, 0], sizes = [8, 128], strides = [1, 1]} : vector<64x128xf32> to vector<8x128xf32>
    %28 = arith.select %10, %26, %27 : vector<8x128xi1>, vector<8x128xf32>
    %29 = vector.extract_strided_slice %22 {offsets = [16, 0], sizes = [8, 128], strides = [1, 1]} : vector<64x128xf32> to vector<8x128xf32>
    %30 = vector.extract_strided_slice %22 {offsets = [40, 0], sizes = [8, 128], strides = [1, 1]} : vector<64x128xf32> to vector<8x128xf32>
    %31 = arith.select %10, %29, %30 : vector<8x128xi1>, vector<8x128xf32>
    %32 = vector.extract_strided_slice %22 {offsets = [24, 0], sizes = [8, 128], strides = [1, 1]} : vector<64x128xf32> to vector<8x128xf32>
    %33 = vector.extract_strided_slice %22 {offsets = [32, 0], sizes = [8, 128], strides = [1, 1]} : vector<64x128xf32> to vector<8x128xf32>
    %34 = arith.select %10, %32, %33 : vector<8x128xi1>, vector<8x128xf32>
    %35 = vector.extract_strided_slice %22 {offsets = [32, 0], sizes = [8, 128], strides = [1, 1]} : vector<64x128xf32> to vector<8x128xf32>
    %36 = vector.extract_strided_slice %22 {offsets = [24, 0], sizes = [8, 128], strides = [1, 1]} : vector<64x128xf32> to vector<8x128xf32>
    %37 = arith.select %10, %35, %36 : vector<8x128xi1>, vector<8x128xf32>
    %38 = vector.extract_strided_slice %22 {offsets = [40, 0], sizes = [8, 128], strides = [1, 1]} : vector<64x128xf32> to vector<8x128xf32>
    %39 = vector.extract_strided_slice %22 {offsets = [16, 0], sizes = [8, 128], strides = [1, 1]} : vector<64x128xf32> to vector<8x128xf32>
    %40 = arith.select %10, %38, %39 : vector<8x128xi1>, vector<8x128xf32>
    %41 = vector.extract_strided_slice %22 {offsets = [48, 0], sizes = [8, 128], strides = [1, 1]} : vector<64x128xf32> to vector<8x128xf32>
    %42 = vector.extract_strided_slice %22 {offsets = [8, 0], sizes = [8, 128], strides = [1, 1]} : vector<64x128xf32> to vector<8x128xf32>
    %43 = arith.select %10, %41, %42 : vector<8x128xi1>, vector<8x128xf32>
    %44 = vector.extract_strided_slice %22 {offsets = [56, 0], sizes = [8, 128], strides = [1, 1]} : vector<64x128xf32> to vector<8x128xf32>
    %45 = vector.extract_strided_slice %22 {offsets = [0, 0], sizes = [8, 128], strides = [1, 1]} : vector<64x128xf32> to vector<8x128xf32>
    %46 = arith.select %10, %44, %45 : vector<8x128xi1>, vector<8x128xf32>
    %cst_11 = arith.constant 0.000000e+00 : f32
    %47 = vector.broadcast %cst_11 : f32 to vector<8x32xf32>
    %cst_12 = arith.constant 0.000000e+00 : f32
    %48 = vector.broadcast %cst_12 : f32 to vector<8x32xf32>
    %cst_13 = arith.constant dense<0.000000e+00> : vector<8x128xf32>
    %49 = tpu.matmul %47, %0, %cst_13 {dimension_numbers = #tpu.dot_dimension_numbers<[1], [0], [0], [1], [0, 0, 1, 1], [], []>} : vector<8x32xf32>, vector<32x128xf32>, vector<8x128xf32> -> vector<8x128xf32>
    %50 = arith.addf %25, %49 : vector<8x128xf32>
    %51 = math.tanh %50 : vector<8x128xf32>
    %52 = arith.mulf %13, %51 : vector<8x128xf32>
    %53 = arith.addf %52, %16 : vector<8x128xf32>
    %54 = vector.extract_strided_slice %53 {offsets = [0, 0], sizes = [8, 32], strides = [1, 1]} : vector<8x128xf32> to vector<8x32xf32>
    %55 = vector.extract_strided_slice %53 {offsets = [0, 32], sizes = [8, 32], strides = [1, 1]} : vector<8x128xf32> to vector<8x32xf32>
    %56 = vector.extract_strided_slice %53 {offsets = [0, 64], sizes = [8, 32], strides = [1, 1]} : vector<8x128xf32> to vector<8x32xf32>
    %57 = vector.extract_strided_slice %53 {offsets = [0, 96], sizes = [8, 32], strides = [1, 1]} : vector<8x128xf32> to vector<8x32xf32>
    %58 = arith.mulf %55, %48 : vector<8x32xf32>
    %59 = arith.mulf %54, %56 : vector<8x32xf32>
    %60 = arith.addf %58, %59 : vector<8x32xf32>
    %61 = math.tanh %60 : vector<8x32xf32>
    %62 = arith.mulf %57, %61 : vector<8x32xf32>
    %cst_14 = arith.constant dense<0.000000e+00> : vector<8x128xf32>
    %63 = tpu.matmul %62, %0, %cst_14 {dimension_numbers = #tpu.dot_dimension_numbers<[1], [0], [0], [1], [0, 0, 1, 1], [], []>} : vector<8x32xf32>, vector<32x128xf32>, vector<8x128xf32> -> vector<8x128xf32>
    %64 = arith.addf %28, %63 : vector<8x128xf32>
    %65 = math.tanh %64 : vector<8x128xf32>
    %66 = arith.mulf %13, %65 : vector<8x128xf32>
    %67 = arith.addf %66, %16 : vector<8x128xf32>
    %68 = vector.extract_strided_slice %67 {offsets = [0, 0], sizes = [8, 32], strides = [1, 1]} : vector<8x128xf32> to vector<8x32xf32>
    %69 = vector.extract_strided_slice %67 {offsets = [0, 32], sizes = [8, 32], strides = [1, 1]} : vector<8x128xf32> to vector<8x32xf32>
    %70 = vector.extract_strided_slice %67 {offsets = [0, 64], sizes = [8, 32], strides = [1, 1]} : vector<8x128xf32> to vector<8x32xf32>
    %71 = vector.extract_strided_slice %67 {offsets = [0, 96], sizes = [8, 32], strides = [1, 1]} : vector<8x128xf32> to vector<8x32xf32>
    %72 = arith.mulf %69, %60 : vector<8x32xf32>
    %73 = arith.mulf %68, %70 : vector<8x32xf32>
    %74 = arith.addf %72, %73 : vector<8x32xf32>
    %75 = math.tanh %74 : vector<8x32xf32>
    %76 = arith.mulf %71, %75 : vector<8x32xf32>
    %cst_15 = arith.constant dense<0.000000e+00> : vector<8x128xf32>
    %77 = tpu.matmul %76, %0, %cst_15 {dimension_numbers = #tpu.dot_dimension_numbers<[1], [0], [0], [1], [0, 0, 1, 1], [], []>} : vector<8x32xf32>, vector<32x128xf32>, vector<8x128xf32> -> vector<8x128xf32>
    %78 = arith.addf %31, %77 : vector<8x128xf32>
    %79 = math.tanh %78 : vector<8x128xf32>
    %80 = arith.mulf %13, %79 : vector<8x128xf32>
    %81 = arith.addf %80, %16 : vector<8x128xf32>
    %82 = vector.extract_strided_slice %81 {offsets = [0, 0], sizes = [8, 32], strides = [1, 1]} : vector<8x128xf32> to vector<8x32xf32>
    %83 = vector.extract_strided_slice %81 {offsets = [0, 32], sizes = [8, 32], strides = [1, 1]} : vector<8x128xf32> to vector<8x32xf32>
    %84 = vector.extract_strided_slice %81 {offsets = [0, 64], sizes = [8, 32], strides = [1, 1]} : vector<8x128xf32> to vector<8x32xf32>
    %85 = vector.extract_strided_slice %81 {offsets = [0, 96], sizes = [8, 32], strides = [1, 1]} : vector<8x128xf32> to vector<8x32xf32>
    %86 = arith.mulf %83, %74 : vector<8x32xf32>
    %87 = arith.mulf %82, %84 : vector<8x32xf32>
    %88 = arith.addf %86, %87 : vector<8x32xf32>
    %89 = math.tanh %88 : vector<8x32xf32>
    %90 = arith.mulf %85, %89 : vector<8x32xf32>
    %cst_16 = arith.constant dense<0.000000e+00> : vector<8x128xf32>
    %91 = tpu.matmul %90, %0, %cst_16 {dimension_numbers = #tpu.dot_dimension_numbers<[1], [0], [0], [1], [0, 0, 1, 1], [], []>} : vector<8x32xf32>, vector<32x128xf32>, vector<8x128xf32> -> vector<8x128xf32>
    %92 = arith.addf %34, %91 : vector<8x128xf32>
    %93 = math.tanh %92 : vector<8x128xf32>
    %94 = arith.mulf %13, %93 : vector<8x128xf32>
    %95 = arith.addf %94, %16 : vector<8x128xf32>
    %96 = vector.extract_strided_slice %95 {offsets = [0, 0], sizes = [8, 32], strides = [1, 1]} : vector<8x128xf32> to vector<8x32xf32>
    %97 = vector.extract_strided_slice %95 {offsets = [0, 32], sizes = [8, 32], strides = [1, 1]} : vector<8x128xf32> to vector<8x32xf32>
    %98 = vector.extract_strided_slice %95 {offsets = [0, 64], sizes = [8, 32], strides = [1, 1]} : vector<8x128xf32> to vector<8x32xf32>
    %99 = vector.extract_strided_slice %95 {offsets = [0, 96], sizes = [8, 32], strides = [1, 1]} : vector<8x128xf32> to vector<8x32xf32>
    %100 = arith.mulf %97, %88 : vector<8x32xf32>
    %101 = arith.mulf %96, %98 : vector<8x32xf32>
    %102 = arith.addf %100, %101 : vector<8x32xf32>
    %103 = math.tanh %102 : vector<8x32xf32>
    %104 = arith.mulf %99, %103 : vector<8x32xf32>
    %cst_17 = arith.constant dense<0.000000e+00> : vector<8x128xf32>
    %105 = tpu.matmul %104, %0, %cst_17 {dimension_numbers = #tpu.dot_dimension_numbers<[1], [0], [0], [1], [0, 0, 1, 1], [], []>} : vector<8x32xf32>, vector<32x128xf32>, vector<8x128xf32> -> vector<8x128xf32>
    %106 = arith.addf %37, %105 : vector<8x128xf32>
    %107 = math.tanh %106 : vector<8x128xf32>
    %108 = arith.mulf %13, %107 : vector<8x128xf32>
    %109 = arith.addf %108, %16 : vector<8x128xf32>
    %110 = vector.extract_strided_slice %109 {offsets = [0, 0], sizes = [8, 32], strides = [1, 1]} : vector<8x128xf32> to vector<8x32xf32>
    %111 = vector.extract_strided_slice %109 {offsets = [0, 32], sizes = [8, 32], strides = [1, 1]} : vector<8x128xf32> to vector<8x32xf32>
    %112 = vector.extract_strided_slice %109 {offsets = [0, 64], sizes = [8, 32], strides = [1, 1]} : vector<8x128xf32> to vector<8x32xf32>
    %113 = vector.extract_strided_slice %109 {offsets = [0, 96], sizes = [8, 32], strides = [1, 1]} : vector<8x128xf32> to vector<8x32xf32>
    %114 = arith.mulf %111, %102 : vector<8x32xf32>
    %115 = arith.mulf %110, %112 : vector<8x32xf32>
    %116 = arith.addf %114, %115 : vector<8x32xf32>
    %117 = math.tanh %116 : vector<8x32xf32>
    %118 = arith.mulf %113, %117 : vector<8x32xf32>
    %cst_18 = arith.constant dense<0.000000e+00> : vector<8x128xf32>
    %119 = tpu.matmul %118, %0, %cst_18 {dimension_numbers = #tpu.dot_dimension_numbers<[1], [0], [0], [1], [0, 0, 1, 1], [], []>} : vector<8x32xf32>, vector<32x128xf32>, vector<8x128xf32> -> vector<8x128xf32>
    %120 = arith.addf %40, %119 : vector<8x128xf32>
    %121 = math.tanh %120 : vector<8x128xf32>
    %122 = arith.mulf %13, %121 : vector<8x128xf32>
    %123 = arith.addf %122, %16 : vector<8x128xf32>
    %124 = vector.extract_strided_slice %123 {offsets = [0, 0], sizes = [8, 32], strides = [1, 1]} : vector<8x128xf32> to vector<8x32xf32>
    %125 = vector.extract_strided_slice %123 {offsets = [0, 32], sizes = [8, 32], strides = [1, 1]} : vector<8x128xf32> to vector<8x32xf32>
    %126 = vector.extract_strided_slice %123 {offsets = [0, 64], sizes = [8, 32], strides = [1, 1]} : vector<8x128xf32> to vector<8x32xf32>
    %127 = vector.extract_strided_slice %123 {offsets = [0, 96], sizes = [8, 32], strides = [1, 1]} : vector<8x128xf32> to vector<8x32xf32>
    %128 = arith.mulf %125, %116 : vector<8x32xf32>
    %129 = arith.mulf %124, %126 : vector<8x32xf32>
    %130 = arith.addf %128, %129 : vector<8x32xf32>
    %131 = math.tanh %130 : vector<8x32xf32>
    %132 = arith.mulf %127, %131 : vector<8x32xf32>
    %cst_19 = arith.constant dense<0.000000e+00> : vector<8x128xf32>
    %133 = tpu.matmul %132, %0, %cst_19 {dimension_numbers = #tpu.dot_dimension_numbers<[1], [0], [0], [1], [0, 0, 1, 1], [], []>} : vector<8x32xf32>, vector<32x128xf32>, vector<8x128xf32> -> vector<8x128xf32>
    %134 = arith.addf %43, %133 : vector<8x128xf32>
    %135 = math.tanh %134 : vector<8x128xf32>
    %136 = arith.mulf %13, %135 : vector<8x128xf32>
    %137 = arith.addf %136, %16 : vector<8x128xf32>
    %138 = vector.extract_strided_slice %137 {offsets = [0, 0], sizes = [8, 32], strides = [1, 1]} : vector<8x128xf32> to vector<8x32xf32>
    %139 = vector.extract_strided_slice %137 {offsets = [0, 32], sizes = [8, 32], strides = [1, 1]} : vector<8x128xf32> to vector<8x32xf32>
    %140 = vector.extract_strided_slice %137 {offsets = [0, 64], sizes = [8, 32], strides = [1, 1]} : vector<8x128xf32> to vector<8x32xf32>
    %141 = vector.extract_strided_slice %137 {offsets = [0, 96], sizes = [8, 32], strides = [1, 1]} : vector<8x128xf32> to vector<8x32xf32>
    %142 = arith.mulf %139, %130 : vector<8x32xf32>
    %143 = arith.mulf %138, %140 : vector<8x32xf32>
    %144 = arith.addf %142, %143 : vector<8x32xf32>
    %145 = math.tanh %144 : vector<8x32xf32>
    %146 = arith.mulf %141, %145 : vector<8x32xf32>
    %cst_20 = arith.constant dense<0.000000e+00> : vector<8x128xf32>
    %147 = tpu.matmul %146, %0, %cst_20 {dimension_numbers = #tpu.dot_dimension_numbers<[1], [0], [0], [1], [0, 0, 1, 1], [], []>} : vector<8x32xf32>, vector<32x128xf32>, vector<8x128xf32> -> vector<8x128xf32>
    %148 = arith.addf %46, %147 : vector<8x128xf32>
    %149 = math.tanh %148 : vector<8x128xf32>
    %150 = arith.mulf %13, %149 : vector<8x128xf32>
    %151 = arith.addf %150, %16 : vector<8x128xf32>
    %152 = vector.extract_strided_slice %151 {offsets = [0, 0], sizes = [8, 32], strides = [1, 1]} : vector<8x128xf32> to vector<8x32xf32>
    %153 = vector.extract_strided_slice %151 {offsets = [0, 32], sizes = [8, 32], strides = [1, 1]} : vector<8x128xf32> to vector<8x32xf32>
    %154 = vector.extract_strided_slice %151 {offsets = [0, 64], sizes = [8, 32], strides = [1, 1]} : vector<8x128xf32> to vector<8x32xf32>
    %155 = vector.extract_strided_slice %151 {offsets = [0, 96], sizes = [8, 32], strides = [1, 1]} : vector<8x128xf32> to vector<8x32xf32>
    %156 = arith.mulf %153, %144 : vector<8x32xf32>
    %157 = arith.mulf %152, %154 : vector<8x32xf32>
    %158 = arith.addf %156, %157 : vector<8x32xf32>
    %159 = math.tanh %158 : vector<8x32xf32>
    %160 = arith.mulf %155, %159 : vector<8x32xf32>
    %161 = tpu.concatenate %160, %158 in 1 : vector<8x32xf32>, vector<8x32xf32> -> vector<8x64xf32>
    %c0_21 = arith.constant 0 : index
    %c0_22 = arith.constant 0 : index
    %162 = vector.load %arg4[%c0_21, %c0_22] : memref<64x128xf32, #tpu.memory_space<vmem>>, vector<64x128xf32>
    %cst_23 = arith.constant dense<0.000000e+00> : vector<8x128xf32>
    %163 = tpu.matmul %161, %162, %cst_23 {dimension_numbers = #tpu.dot_dimension_numbers<[1], [0], [0], [1], [0, 0, 1, 1], [], []>} : vector<8x64xf32>, vector<64x128xf32>, vector<8x128xf32> -> vector<8x128xf32>
    %c0_24 = arith.constant 0 : index
    %c0_25 = arith.constant 0 : index
    %164 = vector.load %arg5[%c0_24, %c0_25] : memref<1x128xf32, #tpu.memory_space<vmem>>, vector<1x128xf32>
    %165 = vector.broadcast %164 : vector<1x128xf32> to vector<8x128xf32>
    %166 = arith.addf %163, %165 : vector<8x128xf32>
    %c0_26 = arith.constant 0 : index
    %c0_27 = arith.constant 0 : index
    %167 = vector.load %arg6[%c0_26, %c0_27] : memref<8x128xf32, #tpu.memory_space<vmem>>, vector<8x128xf32>
    tpu.vector_store %arg6[%c0_26, %c0_27], %166 {strides = array<i32>} : memref<8x128xf32, #tpu.memory_space<vmem>>, vector<8x128xf32>,
    return
  }
}

</mosaic_0001>

<bundles_post_ra>
// kernel: tpu_custom_call.1
= control target key start
LH: loop header
LB: loop body
LE: loop exit
PB: predicated region body
PF: predicated region fallthrough
CT: control target
= control target key end

     0   :  { %11 = vsyncpa [#allocation3], 0  ;;  %s1722_s0 = inlined_call_operand.vmem [shape: f32[64,8], index: 0, kind: input, shape index: {}]   ;;  %s1723_s1 = inlined_call_operand.vmem [shape: f32[8,128], index: 1, kind: input, shape index: {}]   ;;  %s1724_s2 = inlined_call_operand.hbm [shape: f32[32,128], index: 2, kind: input, shape index: {}]   ;;  %s1725_s3 = inlined_call_operand.vmem [shape: f32[1,128], index: 3, kind: input, shape index: {}]   ;;  %s1726_s4 = inlined_call_operand.vmem [shape: f32[64,128], index: 4, kind: input, shape index: {}]   ;;  %s1727_s5 = inlined_call_operand.vmem [shape: f32[1,128], index: 5, kind: input, shape index: {}]   ;;  %s1728_s6 = inlined_call_operand.hbm [shape: f32[8,128], index: 6, kind: output, shape index: {}]  }
   0x1   :  { %12 = vsyncpa [#allocation4], 0  ;;  %s1366_s21 = smov [#allocation2]  }
   0x2   :  { %s22_s22 = sshll.u32 %s1366_s21, 4  ;;  %s23_s22 = int_to_ptr.vmem [resolvable:$true] %s22_s22 }
   0x3   :  { %s1330_s23 = scalar_lea.vmem %s23_s22, 512  ;;  %p1335_p1 = scmp.lt.s32.totalorder %s23_s22, %s23_s22 }
   0x4   :  { %p1331_p0 = scmp.ne.s32.totalorder %s23_s22, %s1330_s23  ;;  %p1336_p2 = scmp.lt.s32.totalorder %s1330_s23, %s1330_s23 }
   0x6   :  { %p1337_p3 = por %p1336_p2, %p1335_p1 }
   0x8   :  { %p1338_p4 = pnand %p1337_p3, %p1331_p0 }
   0xa   :  { %1341 = shalt.err (!%p1338_p4)
}
   0xb   :  { %s1367_s24 = smov 128   ;;  %s1368_s25 = smov 8  }
   0xc   :  { %28 = dma.hbm_to_vmem [thread:$0]  %s1724_s2, 512, %s23_s22, [#allocation3], %s1367_s24, %s1367_s24, %s1368_s25  }
   0xd   :  { %1362 = dma.done.wait [#allocation3], 512  }
   0xe   :  { %1363 = vsyncadd [#allocation3], 4294966784  ;;  %v59_v0 = vld [vmem:[%s1723_s1] sm:$0xff]  ;;  %vm67_vm0 = vcmask 64512   ;;  %v52_v3 = vld [vmem:[%s1722_s0 + $0x8] sm:$0xff]  ;;  %v1369_v8 = vmov 0.0   ;;  %v42_v14 = vlaneseq }
   0xf   :  { %v51_v1 = vld [vmem:[%s1722_s0] sm:$0xff]  ;;  %1158 = vmatprep.subr.mxu0 %v59_v0  ;;  %1279 = vmatprep.subr.mxu1 %v59_v0  ;;  %v56_v4 = vld [vmem:[%s1722_s0 + $0x28] sm:$0xff]  ;;  %v53_v5 = vld [vmem:[%s1722_s0 + $0x10] sm:$0xff]  ;;  %vm1370_vm1 = vmmov 0   ;;  %v1371_v46 = vmov 0.5   ;;  %s1373_s21 = smov 32  }
  0x10   :  { %v55_v2 = vld [vmem:[%s1722_s0 + $0x20] sm:$0xff]  ;;  %1159 = vmatpush3.msra.mxu0 %v59_v0  ;;  %1280 = vmatpush3.msra.mxu1 %v59_v0  ;;  %v1433_v6 = vld [vmem:[#allocation2 + $0x18] sm:$0xff]  ;;  %v57_v7 = vld [vmem:[%s1722_s0 + $0x30] sm:$0xff]  ;;  %v43_v15 = vand.u32 127, %v42_v14  ;;  %vm205_vm6 = vcmask 261120   ;;  %vm992_vm7 = vcmask 523264  }
  0x11   :  { %1160 = vmatprep.mubr.msk.f32.mxu0 %vm67_vm0, %v51_v1  ;;  %1166 = vmatprep.mubr.msk.f32.mxu1 %vm67_vm0, %v55_v2  ;;  %v1442_v9 = vld [vmem:[#allocation2 + $0x10] sm:$0xff]  ;;  %v54_v10 = vld [vmem:[%s1722_s0 + $0x18] sm:$0xff]  ;;  %v1453_v12 = vld [vmem:[#allocation2 + $0x8] sm:$0xff]  ;;  %s1374_s14 = smov [#allocation5]  }
  0x12   :  { %1161 = vmatmul.mubr.msk.f32.vlgmr.msra.gmra.mxu0 %vm67_vm0, %v52_v3  ;;  %1167 = vmatmul.mubr.msk.f32.vlgmr.msra.gmra.mxu1 %vm67_vm0, %v56_v4  ;;  %v58_v11 = vld [vmem:[%s1722_s0 + $0x38] sm:$0xff]  ;;  %v1460_v13 = vld [vmem:[#allocation2] sm:$0xff]  ;;  %v47_v19 = vand.u32 31, %v43_v15  ;;  %vm44_vm3 = vcmp.ge.s32.totalorder %v43_v15, 64  ;;  %vm45_vm4 = vcmp.lt.s32.totalorder %v43_v15, 96  ;;  %s1073_s15 = sshll.u32 %s1374_s14, 4  ;;  %s1074_s15 = int_to_ptr.vmem [resolvable:$true] %s1073_s15 }
  0x13   :  { %1172 = vmatprep.subr.mxu1 %v1369_v8  ;;  %1163 = vmatprep.mubr.msk.f32.mxu0 %vm67_vm0, %v53_v5  ;;  %v1082_v16 = vld [vmem:[%s1725_s3] ss:$0 sm:$0xff]  ;;  %vm46_vm5 = vmand %vm44_vm3, %vm45_vm4  ;;  %s1372_s3 = smov 64   ;;  %p1347_p6 = scmp.lt.s32.totalorder %s1074_s15, %s1074_s15 }
  0x14   :  { %1173 = vmatpush3.msra.mxu1 %v1433_v6  ;;  %1169 = vmatprep.mubr.msk.f32.mxu1 %vm67_vm0, %v57_v7  ;;  %vm1500_vm2 = vcmp.lt.s32.totalorder %v47_v19, 16  ;;  %v1544_v47 = vsel %vm46_vm5, 1.0, %v1371_v46  ;;  %v1546_v49 = vsel %vm46_vm5, 0.0, %v1371_v46 }
  0x15   :  { %1174 = vmatprep.subr.mxu1 %v1369_v8  ;;  %1194 = vmatprep.subr.mxu0 %v1369_v8 }
  0x16   :  { %1175 = vmatpush3.msra.mxu1 %v1442_v9  ;;  %1164 = vmatmul.mubr.msk.f32.gmra.mxu0 %vm67_vm0, %v54_v10 }
  0x17   :  { %1170 = vmatmul.mubr.msk.f32.gmra.mxu1 %vm67_vm0, %v58_v11  ;;  %1176 = vmatprep.subr.mxu1 %v1369_v8 }
  0x18   :  { %1177 = vmatpush3.msra.mxu1 %v1453_v12  ;;  %1180 = vmatprep.mubr.msk.f32.mxu1 %vm1370_vm1, %v1369_v8 }
  0x19   :  { %1178 = vmatprep.subr.mxu1 %v1369_v8  ;;  %1195 = vmatpush3.msra.mxu0 %v1433_v6 }
  0x1a   :  { %1179 = vmatpush3.msra.mxu1 %v1460_v13  ;;  %1196 = vmatprep.subr.mxu0 %v1369_v8 }
  0x1b   :  { %1181 = vmatmul.mubr.f32.vlgmr.msra.gmra.mxu1 %v1369_v8  ;;  %1183 = vmatprep.subr.mxu1 %v1369_v8 }
  0x1c   :  { %1184 = vmatpush3.msra.mxu1 %v1433_v6  ;;  %1191 = vmatprep.mubr.msk.f32.mxu1 %vm1370_vm1, %v1369_v8 }
  0x1d   :  { %1185 = vmatprep.subr.mxu1 %v1369_v8  ;;  %1197 = vmatpush3.msra.mxu0 %v1442_v9 }
  0x1e   :  { %1186 = vmatpush3.msra.mxu1 %v1442_v9  ;;  %1198 = vmatprep.subr.mxu0 %v1369_v8 }
  0x1f   :  { %1187 = vmatprep.subr.mxu1 %v1369_v8  ;;  %1199 = vmatpush3.msra.mxu0 %v1453_v12 }
  0x20   :  { %1188 = vmatpush3.msra.mxu1 %v1453_v12  ;;  %1200 = vmatprep.subr.mxu0 %v1369_v8 }
  0x21   :  { %1189 = vmatprep.subr.mxu1 %v1369_v8  ;;  %1201 = vmatpush3.msra.mxu0 %v1460_v13 }
  0x22   :  { %1190 = vmatpush3.msra.mxu1 %v1460_v13  ;;  %1202 = vmatprep.mubr.msk.f32.mxu0 %vm1370_vm1, %v1369_v8 }
  0x23   :  { %1205 = vmatprep.subr.mxu1 %v1369_v8  ;;  %1216 = vmatprep.subr.mxu0 %v1369_v8 }
  0xd2   :  { %v1162_v17 = vpop.f32.mrf.mxu0  ;;  %v1168_v18 = vpop.f32.mrf.mxu1 }
  0xd3   :  { %v1492_v20 = vadd.f32 %v1162_v17, %v1082_v16  ;;  %v1494_v21 = vadd.f32 %v1168_v18, %v1082_v16 }
  0xd4   :  { %v158_v22 = vpop.f32.mrf.mxu0  ;;  %v178_v23 = vpop.f32.mrf.mxu1 }
  0xd5   :  { %v1496_v24 = vadd.f32 %v1082_v16, %v178_v23  ;;  %v1498_v25 = vadd.f32 %v1082_v16, %v158_v22 }
  0xd6   :  { %v1165_v26 = vpop.f32.mrf.mxu0 }
  0xd7   :  { %v1504_v28 = vadd.f32 %v1165_v26, %v1082_v16  ;;  %v1171_v29 = vpop.f32.mrf.mxu1 }
  0xd8   :  { %v1506_v30 = vadd.f32 %v1171_v29, %v1082_v16  ;;  %v168_v31 = vpop.f32.mrf.mxu0 }
  0xd9   :  { %v1508_v32 = vadd.f32 %v1082_v16, %v168_v31  ;;  %v188_v33 = vpop.f32.mrf.mxu1  ;;  %v200_v34 = vsel %vm1500_vm2, %v1504_v28, %v1496_v24  ;;  %v201_v35 = vsel %vm1500_vm2, %v1496_v24, %v1504_v28 }
  0xda   :  { %v1518_v36 = vadd.f32 %v1082_v16, %v188_v33  ;;  %v197_v37 = vsel %vm1500_vm2, %v1498_v25, %v1506_v30  ;;  %v204_v38 = vsel %vm1500_vm2, %v1506_v30, %v1498_v25  ;;  %v984_v25 = vld [vmem:[%s1726_s4 + $0x38] sm:$0xff]  ;;  %v983_v30 = vld [vmem:[%s1726_s4 + $0x30] sm:$0xff] }
  0xdb   :  { %v275_v39 = vpop.f32.mrf.mxu1  ;;  %v199_v40 = vsel %vm1500_vm2, %v1508_v32, %v1494_v21  ;;  %v202_v41 = vsel %vm1500_vm2, %v1494_v21, %v1508_v32 }
  0xdc   :  { %v279_v42 = vadd.f32 %v275_v39, %v197_v37  ;;  %v198_v43 = vsel %vm1500_vm2, %v1492_v20, %v1518_v36  ;;  %v203_v44 = vsel %vm1500_vm2, %v1518_v36, %v1492_v20 }
  0xdd   :  { %v1182_v45 = vpop.f32.mrf.mxu1 }
  0xde   :  { %1290 = vtanh.f32 %v279_v42 }
  0xeb   :  { %v1291_v48 = vpop.eup %1290 }
  0xec   :  { %v281_v50 = vmul.f32 %v1291_v48, %v1544_v47 }
  0xee   :  { %v282_v51 = vadd.f32 %v281_v50, %v1546_v49 }
  0xf0   :  { %285 = vrot.lane.b32.xlu0 %v282_v51, %s1372_s3  ;;  %v283_v54 = vmul.f32 0.0, %v282_v51 }
 0x162   :  { %v286_v52 = vpop.permute.xlu0 %285 }
 0x163   :  { %v288_v53 = vmul.f32 %v286_v52, %v282_v51 }
 0x165   :  { %290 = vrot.lane.b32.xlu0 %v288_v53, %s1373_s21 }
 0x1d7   :  { %v291_v55 = vpop.permute.xlu0 %290 }
 0x1d8   :  { %v293_v56 = vadd.f32 %v291_v55, %v283_v54 }
 0x1da   :  { %1292 = vtanh.f32 %v293_v56 }
 0x1e7   :  { %v1293_v57 = vpop.eup %1292 }
 0x1e8   :  { %296 = vrot.lane.b32.xlu1 %v1293_v57, %s1372_s3 }
 0x25a   :  { %v297_v58 = vpop.permute.xlu1 %296 }
 0x25b   :  { %v299_v59 = vmul.f32 %v297_v58, %v282_v51 }
 0x25d   :  { %301 = vrot.lane.b32.xlu1 %v299_v59, %s1373_s21 }
 0x2cf   :  { %v302_v60 = vpop.permute.xlu1 %301 }
 0x2d0   :  { %1192 = vmatmul.mubr.msk.f32.vlgmr.msra.gmra.mxu1 %vm205_vm6, %v302_v60 }
 0x2d1   :  { %1206 = vmatpush3.msra.mxu1 %v1433_v6  ;;  %1213 = vmatprep.mubr.msk.f32.mxu1 %vm1370_vm1, %v1369_v8 }
 0x2d2   :  { %1207 = vmatprep.subr.mxu1 %v1369_v8 }
 0x2d3   :  { %1208 = vmatpush3.msra.mxu1 %v1442_v9 }
 0x2d4   :  { %1209 = vmatprep.subr.mxu1 %v1369_v8 }
 0x2d5   :  { %1210 = vmatpush3.msra.mxu1 %v1453_v12 }
 0x2d6   :  { %1211 = vmatprep.subr.mxu1 %v1369_v8 }
 0x2d7   :  { %1212 = vmatpush3.msra.mxu1 %v1460_v13 }
 0x2d8   :  { %1227 = vmatprep.subr.mxu1 %v1369_v8 }
 0x390   :  { %v371_v61 = vpop.f32.mrf.mxu1 }
 0x391   :  { %v375_v62 = vadd.f32 %v371_v61, %v198_v43 }
 0x392   :  { %v1193_v63 = vpop.f32.mrf.mxu1 }
 0x393   :  { %1294 = vtanh.f32 %v375_v62 }
 0x3a0   :  { %v1295_v0 = vpop.eup %1294 }
 0x3a1   :  { %v377_v1 = vmul.f32 %v1295_v0, %v1544_v47 }
 0x3a3   :  { %v378_v2 = vadd.f32 %v377_v1, %v1546_v49 }
 0x3a5   :  { %381 = vrot.lane.b32.xlu0 %v378_v2, %s1372_s3  ;;  %v379_v5 = vmul.f32 %v378_v2, %v293_v56 }
 0x417   :  { %v382_v3 = vpop.permute.xlu0 %381 }
 0x418   :  { %v384_v4 = vmul.f32 %v382_v3, %v378_v2 }
 0x41a   :  { %386 = vrot.lane.b32.xlu1 %v384_v4, %s1373_s21 }
 0x48c   :  { %v387_v7 = vpop.permute.xlu1 %386 }
 0x48d   :  { %v389_v10 = vadd.f32 %v387_v7, %v379_v5 }
 0x48f   :  { %1296 = vtanh.f32 %v389_v10 }
 0x49c   :  { %v1297_v11 = vpop.eup %1296 }
 0x49d   :  { %392 = vrot.lane.b32.xlu0 %v1297_v11, %s1372_s3 }
 0x50f   :  { %v393_v14 = vpop.permute.xlu0 %392 }
 0x510   :  { %v395_v15 = vmul.f32 %v393_v14, %v378_v2 }
 0x512   :  { %397 = vrot.lane.b32.xlu1 %v395_v15, %s1373_s21 }
 0x584   :  { %v398_v16 = vpop.permute.xlu1 %397 }
 0x585   :  { %1203 = vmatmul.mubr.msk.f32.vlgmr.msra.gmra.mxu0 %vm205_vm6, %v398_v16 }
 0x586   :  { %1217 = vmatpush3.msra.mxu0 %v1433_v6  ;;  %1224 = vmatprep.mubr.msk.f32.mxu0 %vm1370_vm1, %v1369_v8 }
 0x587   :  { %1218 = vmatprep.subr.mxu0 %v1369_v8 }
 0x588   :  { %1219 = vmatpush3.msra.mxu0 %v1442_v9 }
 0x589   :  { %1220 = vmatprep.subr.mxu0 %v1369_v8 }
 0x58a   :  { %1221 = vmatpush3.msra.mxu0 %v1453_v12 }
 0x58b   :  { %1222 = vmatprep.subr.mxu0 %v1369_v8 }
 0x58c   :  { %1223 = vmatpush3.msra.mxu0 %v1460_v13 }
 0x58d   :  { %1238 = vmatprep.subr.mxu0 %v1369_v8 }
 0x645   :  { %v467_v17 = vpop.f32.mrf.mxu0 }
 0x646   :  { %v471_v18 = vadd.f32 %v467_v17, %v199_v40 }
 0x647   :  { %v1204_v19 = vpop.f32.mrf.mxu0 }
 0x648   :  { %1298 = vtanh.f32 %v471_v18 }
 0x655   :  { %v1299_v22 = vpop.eup %1298 }
 0x656   :  { %v473_v23 = vmul.f32 %v1299_v22, %v1544_v47 }
 0x658   :  { %v474_v26 = vadd.f32 %v473_v23, %v1546_v49 }
 0x65a   :  { %477 = vrot.lane.b32.xlu0 %v474_v26, %s1372_s3  ;;  %v475_v33 = vmul.f32 %v474_v26, %v389_v10 }
 0x6cc   :  { %v478_v29 = vpop.permute.xlu0 %477 }
 0x6cd   :  { %v480_v31 = vmul.f32 %v478_v29, %v474_v26 }
 0x6cf   :  { %482 = vrot.lane.b32.xlu1 %v480_v31, %s1373_s21 }
 0x741   :  { %v483_v37 = vpop.permute.xlu1 %482 }
 0x742   :  { %v485_v39 = vadd.f32 %v483_v37, %v475_v33 }
 0x744   :  { %1300 = vtanh.f32 %v485_v39 }
 0x751   :  { %v1301_v42 = vpop.eup %1300 }
 0x752   :  { %488 = vrot.lane.b32.xlu0 %v1301_v42, %s1372_s3 }
 0x7c4   :  { %v489_v40 = vpop.permute.xlu0 %488 }
 0x7c5   :  { %v491_v43 = vmul.f32 %v489_v40, %v474_v26 }
 0x7c7   :  { %493 = vrot.lane.b32.xlu1 %v491_v43, %s1373_s21 }
 0x839   :  { %v494_v45 = vpop.permute.xlu1 %493 }
 0x83a   :  { %1214 = vmatmul.mubr.msk.f32.vlgmr.msra.gmra.mxu1 %vm205_vm6, %v494_v45 }
 0x83b   :  { %1228 = vmatpush3.msra.mxu1 %v1433_v6  ;;  %1235 = vmatprep.mubr.msk.f32.mxu1 %vm1370_vm1, %v1369_v8 }
 0x83c   :  { %1229 = vmatprep.subr.mxu1 %v1369_v8 }
 0x83d   :  { %1230 = vmatpush3.msra.mxu1 %v1442_v9 }
 0x83e   :  { %1231 = vmatprep.subr.mxu1 %v1369_v8 }
 0x83f   :  { %1232 = vmatpush3.msra.mxu1 %v1453_v12 }
 0x840   :  { %1233 = vmatprep.subr.mxu1 %v1369_v8 }
 0x841   :  { %1234 = vmatpush3.msra.mxu1 %v1460_v13 }
 0x842   :  { %1249 = vmatprep.subr.mxu1 %v1369_v8 }
 0x8fa   :  { %v563_v46 = vpop.f32.mrf.mxu1 }
 0x8fb   :  { %v567_v48 = vadd.f32 %v563_v46, %v200_v34 }
 0x8fc   :  { %v1215_v50 = vpop.f32.mrf.mxu1 }
 0x8fd   :  { %1302 = vtanh.f32 %v567_v48 }
 0x90a   :  { %v1303_v51 = vpop.eup %1302 }
 0x90b   :  { %v569_v52 = vmul.f32 %v1303_v51, %v1544_v47 }
 0x90d   :  { %v570_v53 = vadd.f32 %v569_v52, %v1546_v49 }
 0x90f   :  { %573 = vrot.lane.b32.xlu0 %v570_v53, %s1372_s3  ;;  %v571_v56 = vmul.f32 %v570_v53, %v485_v39 }
 0x981   :  { %v574_v54 = vpop.permute.xlu0 %573 }
 0x982   :  { %v576_v55 = vmul.f32 %v574_v54, %v570_v53 }
 0x984   :  { %578 = vrot.lane.b32.xlu1 %v576_v55, %s1373_s21 }
 0x9f6   :  { %v579_v57 = vpop.permute.xlu1 %578 }
 0x9f7   :  { %v581_v58 = vadd.f32 %v579_v57, %v571_v56 }
 0x9f9   :  { %1304 = vtanh.f32 %v581_v58 }
 0xa06   :  { %v1305_v59 = vpop.eup %1304 }
 0xa07   :  { %584 = vrot.lane.b32.xlu0 %v1305_v59, %s1372_s3 }
 0xa79   :  { %v585_v34 = vpop.permute.xlu0 %584 }
 0xa7a   :  { %v587_v60 = vmul.f32 %v585_v34, %v570_v53 }
 0xa7c   :  { %589 = vrot.lane.b32.xlu1 %v587_v60, %s1373_s21  ;;  %v979_v60 = vld [vmem:[%s1726_s4 + $0x10] sm:$0xff] }
 0xaee   :  { %v590_v61 = vpop.permute.xlu1 %589 }
 0xaef   :  { %1225 = vmatmul.mubr.msk.f32.vlgmr.msra.gmra.mxu0 %vm205_vm6, %v590_v61 }
 0xaf0   :  { %1239 = vmatpush3.msra.mxu0 %v1433_v6  ;;  %1246 = vmatprep.mubr.msk.f32.mxu0 %vm1370_vm1, %v1369_v8 }
 0xaf1   :  { %1240 = vmatprep.subr.mxu0 %v1369_v8 }
 0xaf2   :  { %1241 = vmatpush3.msra.mxu0 %v1442_v9 }
 0xaf3   :  { %1242 = vmatprep.subr.mxu0 %v1369_v8 }
 0xaf4   :  { %1243 = vmatpush3.msra.mxu0 %v1453_v12 }
 0xaf5   :  { %1244 = vmatprep.subr.mxu0 %v1369_v8 }
 0xaf6   :  { %1245 = vmatpush3.msra.mxu0 %v1460_v13 }
 0xaf7   :  { %1260 = vmatprep.subr.mxu0 %v1369_v8 }
 0xbaf   :  { %v659_v62 = vpop.f32.mrf.mxu0 }
 0xbb0   :  { %v663_v63 = vadd.f32 %v659_v62, %v201_v35  ;;  %v978_v62 = vld [vmem:[%s1726_s4 + $0x8] sm:$0xff] }
 0xbb1   :  { %v1226_v0 = vpop.f32.mrf.mxu0 }
 0xbb2   :  { %1306 = vtanh.f32 %v663_v63  ;;  %v977_v63 = vld [vmem:[%s1726_s4] sm:$0xff] }
 0xbbf   :  { %v1307_v1 = vpop.eup %1306 }
 0xbc0   :  { %v665_v2 = vmul.f32 %v1307_v1, %v1544_v47 }
 0xbc2   :  { %v666_v3 = vadd.f32 %v665_v2, %v1546_v49 }
 0xbc4   :  { %669 = vrot.lane.b32.xlu0 %v666_v3, %s1372_s3  ;;  %v667_v7 = vmul.f32 %v666_v3, %v581_v58 }
 0xc36   :  { %v670_v4 = vpop.permute.xlu0 %669 }
 0xc37   :  { %v672_v5 = vmul.f32 %v670_v4, %v666_v3  ;;  %v1098_v4 = vld [vmem:[%s1727_s5] ss:$0 sm:$0xff] }
 0xc39   :  { %674 = vrot.lane.b32.xlu1 %v672_v5, %s1373_s21 }
 0xcab   :  { %v675_v10 = vpop.permute.xlu1 %674 }
 0xcac   :  { %v677_v11 = vadd.f32 %v675_v10, %v667_v7 }
 0xcae   :  { %1308 = vtanh.f32 %v677_v11 }
 0xcbb   :  { %v1309_v14 = vpop.eup %1308 }
 0xcbc   :  { %680 = vrot.lane.b32.xlu0 %v1309_v14, %s1372_s3 }
 0xd2e   :  { %v681_v24 = vpop.permute.xlu0 %680 }
 0xd2f   :  { %v683_v28 = vmul.f32 %v681_v24, %v666_v3 }
 0xd31   :  { %685 = vrot.lane.b32.xlu1 %v683_v28, %s1373_s21 }
 0xda3   :  { %v686_v35 = vpop.permute.xlu1 %685 }
 0xda4   :  { %1236 = vmatmul.mubr.msk.f32.vlgmr.msra.gmra.mxu1 %vm205_vm6, %v686_v35 }
 0xda5   :  { %1250 = vmatpush3.msra.mxu1 %v1433_v6  ;;  %1257 = vmatprep.mubr.msk.f32.mxu1 %vm1370_vm1, %v1369_v8 }
 0xda6   :  { %1251 = vmatprep.subr.mxu1 %v1369_v8 }
 0xda7   :  { %1252 = vmatpush3.msra.mxu1 %v1442_v9 }
 0xda8   :  { %1253 = vmatprep.subr.mxu1 %v1369_v8 }
 0xda9   :  { %1254 = vmatpush3.msra.mxu1 %v1453_v12 }
 0xdaa   :  { %1255 = vmatprep.subr.mxu1 %v1369_v8 }
 0xdab   :  { %1256 = vmatpush3.msra.mxu1 %v1460_v13 }
 0xe64   :  { %v755_v15 = vpop.f32.mrf.mxu1 }
 0xe65   :  { %v759_v6 = vadd.f32 %v755_v15, %v202_v41 }
 0xe66   :  { %v1237_v16 = vpop.f32.mrf.mxu1 }
 0xe67   :  { %1310 = vtanh.f32 %v759_v6 }
 0xe74   :  { %v1311_v17 = vpop.eup %1310 }
 0xe75   :  { %v761_v9 = vmul.f32 %v1311_v17, %v1544_v47 }
 0xe77   :  { %v762_v18 = vadd.f32 %v761_v9, %v1546_v49 }
 0xe79   :  { %765 = vrot.lane.b32.xlu0 %v762_v18, %s1372_s3  ;;  %v763_v13 = vmul.f32 %v762_v18, %v677_v11 }
 0xeeb   :  { %v766_v12 = vpop.permute.xlu0 %765 }
 0xeec   :  { %v768_v19 = vmul.f32 %v766_v12, %v762_v18 }
 0xeee   :  { %770 = vrot.lane.b32.xlu1 %v768_v19, %s1373_s21 }
 0xf60   :  { %v771_v22 = vpop.permute.xlu1 %770 }
 0xf61   :  { %v773_v23 = vadd.f32 %v771_v22, %v763_v13 }
 0xf63   :  { %1312 = vtanh.f32 %v773_v23 }
 0xf70   :  { %v1313_v26 = vpop.eup %1312 }
 0xf71   :  { %776 = vrot.lane.b32.xlu0 %v1313_v26, %s1372_s3 }
 0xfe3   :  { %v777_v21 = vpop.permute.xlu0 %776 }
 0xfe4   :  { %v779_v32 = vmul.f32 %v777_v21, %v762_v18 }
 0xfe6   :  { %781 = vrot.lane.b32.xlu1 %v779_v32, %s1373_s21 }
0x1058   :  { %v782_v41 = vpop.permute.xlu1 %781 }
0x1059   :  { %1247 = vmatmul.mubr.msk.f32.vlgmr.msra.gmra.mxu0 %vm205_vm6, %v782_v41 }
0x105a   :  { %1276 = vmatprep.mubr.msk.f32.mxu0 %vm1370_vm1, %v1369_v8  ;;  %1261 = vmatpush3.msra.mxu0 %v984_v25 }
0x105b   :  { %1262 = vmatprep.subr.mxu0 %v1369_v8 }
0x105c   :  { %1263 = vmatpush3.msra.mxu0 %v983_v30 }
0x105d   :  { %1264 = vmatprep.subr.mxu0 %v1369_v8 }
0x1119   :  { %v851_v29 = vpop.f32.mrf.mxu0 }
0x111a   :  { %v855_v31 = vadd.f32 %v851_v29, %v203_v44 }
0x111b   :  { %v1248_v33 = vpop.f32.mrf.mxu0 }
0x111c   :  { %1314 = vtanh.f32 %v855_v31 }
0x1129   :  { %v1315_v37 = vpop.eup %1314 }
0x112a   :  { %v857_v39 = vmul.f32 %v1315_v37, %v1544_v47 }
0x112c   :  { %v858_v42 = vadd.f32 %v857_v39, %v1546_v49 }
0x112e   :  { %861 = vrot.lane.b32.xlu0 %v858_v42, %s1372_s3  ;;  %v859_v45 = vmul.f32 %v858_v42, %v773_v23 }
0x11a0   :  { %v862_v40 = vpop.permute.xlu0 %861 }
0x11a1   :  { %v864_v43 = vmul.f32 %v862_v40, %v858_v42 }
0x11a3   :  { %866 = vrot.lane.b32.xlu1 %v864_v43, %s1373_s21 }
0x1215   :  { %v867_v46 = vpop.permute.xlu1 %866 }
0x1216   :  { %v869_v48 = vadd.f32 %v867_v46, %v859_v45 }
0x1218   :  { %1316 = vtanh.f32 %v869_v48 }
0x1225   :  { %v1317_v50 = vpop.eup %1316 }
0x1226   :  { %872 = vrot.lane.b32.xlu0 %v1317_v50, %s1372_s3 }
0x1298   :  { %v873_v20 = vpop.permute.xlu0 %872 }
0x1299   :  { %v875_v36 = vmul.f32 %v873_v20, %v858_v42 }
0x129b   :  { %877 = vrot.lane.b32.xlu1 %v875_v36, %s1373_s21 }
0x130d   :  { %v878_v44 = vpop.permute.xlu1 %877 }
0x130e   :  { %1258 = vmatmul.mubr.msk.f32.vlgmr.msra.gmra.mxu1 %vm205_vm6, %v878_v44 }
0x13ce   :  { %v947_v51 = vpop.f32.mrf.mxu1 }
0x13cf   :  { %v951_v52 = vadd.f32 %v947_v51, %v204_v38  ;;  %v982_v38 = vld [vmem:[%s1726_s4 + $0x28] sm:$0xff] }
0x13d0   :  { %v1259_v53 = vpop.f32.mrf.mxu1  ;;  %1265 = vmatpush3.msra.mxu0 %v982_v38 }
0x13d1   :  { %1318 = vtanh.f32 %v951_v52  ;;  %1266 = vmatprep.subr.mxu0 %v1369_v8 }
0x13de   :  { %v1319_v54 = vpop.eup %1318 }
0x13df   :  { %v953_v55 = vmul.f32 %v1319_v54, %v1544_v47  ;;  %v981_v47 = vld [vmem:[%s1726_s4 + $0x20] sm:$0xff] }
0x13e0   :  { %1267 = vmatpush3.msra.mxu0 %v981_v47 }
0x13e1   :  { %v954_v56 = vadd.f32 %v953_v55, %v1546_v49  ;;  %v980_v49 = vld [vmem:[%s1726_s4 + $0x18] sm:$0xff]  ;;  %1268 = vmatprep.subr.mxu0 %v1369_v8  ;;  %s1342_s4 = scalar_lea.vmem %s1074_s15, 128 }
0x13e2   :  { %1269 = vmatpush3.msra.mxu0 %v980_v49  ;;  %p1343_p5 = scmp.ne.s32.totalorder %s1074_s15, %s1342_s4  ;;  %p1348_p7 = scmp.lt.s32.totalorder %s1342_s4, %s1342_s4 }
0x13e3   :  { %957 = vrot.lane.b32.xlu0 %v954_v56, %s1372_s3  ;;  %v955_v59 = vmul.f32 %v954_v56, %v869_v48  ;;  %1270 = vmatprep.subr.mxu0 %v1369_v8 }
0x13e4   :  { %1271 = vmatpush3.msra.mxu0 %v979_v60  ;;  %p1349_p8 = por %p1348_p7, %p1347_p6 }
0x13e5   :  { %1272 = vmatprep.subr.mxu0 %v1369_v8 }
0x13e6   :  { %1273 = vmatpush3.msra.mxu0 %v978_v62  ;;  %p1350_p9 = pnand %p1349_p8, %p1343_p5 }
0x13e7   :  { %1274 = vmatprep.subr.mxu0 %v1369_v8 }
0x13e8   :  { %1275 = vmatpush3.msra.mxu0 %v977_v63 }
0x1455   :  { %v958_v57 = vpop.permute.xlu0 %957 }
0x1456   :  { %v960_v58 = vmul.f32 %v958_v57, %v954_v56 }
0x1458   :  { %962 = vrot.lane.b32.xlu1 %v960_v58, %s1373_s21 }
0x14ca   :  { %v963_v34 = vpop.permute.xlu1 %962 }
0x14cb   :  { %v965_v27 = vadd.f32 %v963_v34, %v955_v59 }
0x14cd   :  { %1320 = vtanh.f32 %v965_v27 }
0x14da   :  { %v1321_v61 = vpop.eup %1320 }
0x14db   :  { %968 = vrot.lane.b32.xlu0 %v1321_v61, %s1372_s3 }
0x154d   :  { %v969_v0 = vpop.permute.xlu0 %968 }
0x154e   :  { %v971_v1 = vmul.f32 %v969_v0, %v954_v56 }
0x1550   :  { %973 = vrot.lane.b32.xlu1 %v971_v1, %s1373_s21 }
0x15c2   :  { %v974_v2 = vpop.permute.xlu1 %973 }
0x15c3   :  { %v976_v3 = vsel %vm205_vm6, %v974_v2, %v965_v27 }
0x15c4   :  { %1277 = vmatmul.mubr.msk.f32.vlgmr.msra.gmra.mxu0 %vm992_vm7, %v976_v3 }
0x1684   :  { %v1062_v8 = vpop.f32.mrf.mxu0 }
0x1685   :  { %v1063_v5 = vadd.f32 %v1098_v4, %v1062_v8 }
0x1686   :  { %v1278_v7 = vpop.f32.mrf.mxu0 }
0x1687   :  { %1066 = vst [vmem:[#allocation5] sm:$0xff] %v1063_v5 }
0x1688   :  { %1353 = shalt.err (!%p1350_p9)
}
0x1689   :  { %1076 = dma.vmem_to_hbm [thread:$0]  %s1074_s15, 128, %s1728_s6, [#allocation4]  }
0x168a   :  { %1364 = dma.done.wait [#allocation4], 128  }
0x168b   :  { %1365 = vsyncadd [#allocation4], 4294967168 }
0x168c   :  { %1080 = vsyncpa [#allocation3], 1 }
0x168d   :  { %1081 = vsyncpa [#allocation4], 1 }

</bundles_post_ra>
